<compile_context>
chip_gen: v6e
topology: v6e:2x2x1
jax: 0.10.0
libtpu: 0.0.40
codegen_flags: <defaults>
</compile_context>

<pallas_src>
import functools
import math

import jax
import jax.numpy as jnp
from jax import lax
from jax.experimental import pallas as pl
from jax.experimental.pallas import tpu as pltpu


# --------------------------------------------------------------------------- #
# Kernel
# --------------------------------------------------------------------------- #
def _gap_linear_kernel(x_ref, w_ref, b_ref, o_ref, acc_ref, *,
                       inv_s, need_s_mask, last_s_valid):
    """Fused global-average-pool (over dim=1) + Linear.

    x_ref  : [tB, tS, F_in]   current (B-tile, S-tile) of the streamed input
    w_ref  : [F_in, F_out]    Linear weight, pre-transposed in the wrapper
    b_ref  : [1,  F_out]      Linear bias
    o_ref  : [tB, F_out]      output tile (resident across the S grid axis)
    acc_ref: [tB, F_in] f32   running S-sum scratch (persists across S tiles)
    """
    s_idx = pl.program_id(1)
    n_s = pl.num_programs(1)

    @pl.when(s_idx == 0)
    def _init():
        acc_ref[...] = jnp.zeros_like(acc_ref)

    if need_s_mask:
        # tS does not divide S: the last S block extends past the array and its
        # padded rows hold undefined data -> mask them out on that step only.
        @pl.when(s_idx != n_s - 1)
        def _full():
            acc_ref[...] += jnp.sum(x_ref[...], axis=1, dtype=jnp.float32)

        @pl.when(s_idx == n_s - 1)
        def _masked():
            rows = lax.broadcasted_iota(jnp.int32, x_ref.shape, 1)
            x_m = jnp.where(rows < last_s_valid, x_ref[...],
                            jnp.zeros((), x_ref.dtype))
            acc_ref[...] += jnp.sum(x_m, axis=1, dtype=jnp.float32)
    else:
        # Stream x: accumulate the S-sum in f32 without materializing an
        # upcast copy of the whole tile.
        acc_ref[...] += jnp.sum(x_ref[...], axis=1, dtype=jnp.float32)

    @pl.when(s_idx == n_s - 1)
    def _finalize():
        # Linear once per B-tile: pooled @ W_t + b, contracting acc dim 1
        # against the pre-transposed weight's dim 0 on the MXU.
        w = w_ref[...]                 # native dtype: no in-kernel upcast copy
        lhs = acc_ref[...]             # [tB, F_in] f32 accumulator
        if w.dtype != jnp.float32:     # bf16/int8 weights: feed the fast MXU path
            lhs = lhs.astype(w.dtype)
        out = lax.dot_general(
            lhs, w,
            dimension_numbers=(((1,), (0,)), ((), ())),
            preferred_element_type=jnp.float32,
        )
        # Apply the 1/S mean scale once, on the small [tB, F_out] result.
        out = out * inv_s + b_ref[...].astype(jnp.float32)
        o_ref[...] = out.astype(o_ref.dtype)


# --------------------------------------------------------------------------- #
# Tiling / VMEM helpers
# --------------------------------------------------------------------------- #
def _round_up(n, m):
    return ((int(n) + m - 1) // m) * m


def _padded_2d_bytes(rows, cols, dtype):
    """Physical VMEM footprint of a 2-D buffer: sublane/lane padded."""
    it = jnp.dtype(dtype).itemsize
    sub = max(8, 32 // it)
    return _round_up(max(int(rows), 1), sub) * _round_up(max(int(cols), 1), 128) * it


def _vmem_capacity_bytes():
    """Per-core VMEM capacity; conservative 64 MiB (v7x) fallback."""
    try:
        info = pltpu.get_tpu_info()
        for name in ("vmem_capacity_bytes", "vmem_size_bytes", "vmem_bytes"):
            cap = getattr(info, name, None)
            if cap:
                return int(cap)
    except Exception:
        pass
    return 64 << 20


def _largest_aligned_divisor(dim, target, align):
    """Largest divisor of `dim` that is <= target and a multiple of `align`."""
    target = min(int(target), int(dim))
    for cand in range(target, align - 1, -1):
        if cand % align == 0 and dim % cand == 0:
            return cand
    return None


def _pick_batch_tile(B, max_tb, align):
    """Sublane-pack-aligned B tile; guarantees >= 2 B tiles whenever B allows
    it (so both v7x TensorCores get work). A non-divisor tile is fine: the
    out-of-range output rows of the last block are discarded on store."""
    if B <= align:
        return B                      # full dim is always a legal block extent
    target = min(max_tb, B)
    half = (B // 2) // align * align  # prefer >= 2 tiles for megacore sharding
    if half >= align:
        target = min(target, half)
    target = max(align, (target // align) * align)
    tb = _largest_aligned_divisor(B, target, align)
    return tb if tb is not None else target


def _pick_seq_tile(S, cap_rows, align):
    """Largest S tile that fits the VMEM budget: prefer full S, then the
    biggest aligned divisor; otherwise an aligned non-divisor tile (the kernel
    masks the last S step). Never exceeds the budget."""
    cap_rows = max(align, (int(cap_rows) // align) * align)
    if S <= cap_rows:
        return S
    ts = _largest_aligned_divisor(S, cap_rows, align)
    if ts is not None:
        return ts
    return cap_rows


# --------------------------------------------------------------------------- #
# Wrapper
# --------------------------------------------------------------------------- #
def global_avg_pool(x, weight, bias, *, max_tb=256, max_ts=None,
                    x_buffers=2, single_buffer_resident=None):
    """x: [B, S, F_in]; weight: [F_out, F_in] (torch layout); bias: [F_out].

    Returns Linear(weight, bias)(x.mean(axis=1)) -> [B, F_out].

    max_ts: optional cap on the S tile (mainly for tests); by default the
            generation-aware VMEM budget alone bounds the tile.
    x_buffers: input pipeline depth for x (sweep 3 if DMA issue latency is
               exposed with many tiny grid steps).
    single_buffer_resident: force single-buffering of the resident weight/bias
               blocks; default: auto (on when the padded weight is >= 2 MiB).
    """
    B, S, F_in = x.shape
    F_out, F_in_w = weight.shape
    assert F_in_w == F_in, (weight.shape, x.shape)
    assert bias.shape == (F_out,), bias.shape

    x_item = jnp.dtype(x.dtype).itemsize
    w_item = jnp.dtype(weight.dtype).itemsize
    sub_x = max(8, 32 // x_item)          # sublane pack: 8 f32 / 16 bf16 / 32 int8

    # ---- generation-aware x-tile budget (this op is HBM-bound on x) --------
    vmem_cap = _vmem_capacity_bytes()
    if vmem_cap >= (96 << 20):            # v5e / v6e: 128 MiB per core
        x_budget = vmem_cap // 2
    else:                                 # v7x: 64 MiB per core
        x_budget = min(24 << 20, (vmem_cap * 3) // 8)

    # ---- resident operands: single-buffer large weights (constant index_map)
    w_one = _padded_2d_bytes(F_in, F_out, weight.dtype)   # transposed [F_in, F_out]
    if single_buffer_resident is None:
        single_buffer_resident = w_one >= (2 << 20)
    res_bufs = 1 if single_buffer_resident else 2

    # ---- batch tile ---------------------------------------------------------
    tB = _pick_batch_tile(B, max_tb, sub_x)

    # ---- padded VMEM footprint of everything that is not the x stream ------
    resident = (res_bufs * w_one
                + res_bufs * _padded_2d_bytes(1, F_out, bias.dtype)
                + 2 * _padded_2d_bytes(tB, F_out, x.dtype)        # output (2 bufs)
                + _padded_2d_bytes(tB, F_in, jnp.float32))        # acc scratch

    headroom = 6 << 20
    x_budget = min(x_budget, max(vmem_cap - resident - headroom, 4 << 20))

    # ---- sequence tile from the budget (lane/sublane padding included) -----
    f_in_pad = _round_up(F_in, 128)
    per_row = x_buffers * tB * f_in_pad * x_item          # bytes per S row of tile
    rows_fit = max(int(x_budget // max(per_row, 1)), sub_x)
    if max_ts is not None:
        rows_fit = min(rows_fit, max(int(max_ts), sub_x))
    tS = _pick_seq_tile(S, rows_fit, sub_x)

    grid = (pl.cdiv(B, tB), pl.cdiv(S, tS))
    need_s_mask = (S % tS) != 0
    last_s_valid = S - (grid[1] - 1) * tS

    # ---- explicit scoped-VMEM limit with headroom ---------------------------
    x_bytes = x_buffers * tB * _round_up(tS, sub_x) * f_in_pad * x_item
    need = x_bytes + resident
    vmem_limit = int(min(max(need + (4 << 20), 16 << 20), vmem_cap))

    # One-time HBM-side transpose: contraction becomes LHS-last x RHS-first,
    # F_out lands on the dense lane axis of the result.
    w_t = jnp.transpose(weight)           # [F_in, F_out]
    b2d = bias.reshape(1, F_out)

    cost = pl.CostEstimate(
        flops=B * S * F_in + 2 * B * F_in * F_out,
        transcendentals=0,
        bytes_accessed=(B * S * F_in * x_item
                        + F_in * F_out * w_item
                        + F_out * jnp.dtype(bias.dtype).itemsize
                        + B * F_out * x_item),
    )

    kernel = functools.partial(_gap_linear_kernel, inv_s=1.0 / S,
                               need_s_mask=need_s_mask,
                               last_s_valid=last_s_valid)

    # Resident (constant-index) operands: single-buffer when large.
    res_kwargs = dict(pipeline_mode=pl.Buffered(1)) if single_buffer_resident else {}
    if x_buffers != 2:
        x_spec = pl.BlockSpec((tB, tS, F_in), lambda b, s: (b, s, 0),
                              pipeline_mode=pl.Buffered(int(x_buffers)))
    else:
        x_spec = pl.BlockSpec((tB, tS, F_in), lambda b, s: (b, s, 0))

    return pl.pallas_call(
        kernel,
        out_shape=jax.ShapeDtypeStruct((B, F_out), x.dtype),
        grid_spec=pltpu.PrefetchScalarGridSpec(
            num_scalar_prefetch=0,
            grid=grid,
            in_specs=[
                x_spec,
                pl.BlockSpec((F_in, F_out), lambda b, s: (0, 0), **res_kwargs),
                pl.BlockSpec((1, F_out), lambda b, s: (0, 0), **res_kwargs),
            ],
            out_specs=pl.BlockSpec((tB, F_out), lambda b, s: (b, 0)),
            scratch_shapes=[pltpu.VMEM((tB, F_in), jnp.float32)],
        ),
        compiler_params=pltpu.CompilerParams(
            # B-tiles are independent -> shard across v7x's two TensorCores;
            # S is the reduction axis (resident output) -> arbitrary, last.
            dimension_semantics=("parallel", "arbitrary"),
            vmem_limit_bytes=vmem_limit,
        ),
        cost_estimate=cost,
    )(x, w_t, b2d)


# --------------------------------------------------------------------------- #
# Self-test
# --------------------------------------------------------------------------- #
if __name__ == "__main__":
    key = jax.random.PRNGKey(0)
    keys = jax.random.split(key, 9)

    def ref_fn(x, w, b):
        return x.mean(axis=1) @ w.T + b

    # --- 1) Small demo consistent with the module forward -------------------
    B, S, F_in, F_out = 2, 8, 32, 16
    x = jax.random.normal(keys[0], (B, S, F_in), dtype=jnp.float32)
    bound = 1.0 / math.sqrt(F_in)
    w = jax.random.uniform(keys[1], (F_out, F_in), minval=-bound, maxval=bound,
                           dtype=jnp.float32)
    b = jax.random.uniform(keys[2], (F_out,), minval=-bound, maxval=bound,
                           dtype=jnp.float32)
    out = jax.block_until_ready(global_avg_pool(x, w, b))
    assert out.shape == (B, F_out)
    assert jnp.allclose(out, ref_fn(x, w, b), atol=1e-5, rtol=1e-5), "mismatch (small)"

    # --- 2) Multi-tile: >=2 B tiles (megacore split) + several S tiles -------
    B2, S2, F2i, F2o = 16, 64, 128, 128
    x2 = jax.random.normal(keys[3], (B2, S2, F2i), dtype=jnp.float32)
    bound2 = 1.0 / math.sqrt(F2i)
    w2 = jax.random.uniform(keys[4], (F2o, F2i), minval=-bound2, maxval=bound2,
                            dtype=jnp.float32)
    b2 = jax.random.uniform(keys[5], (F2o,), minval=-bound2, maxval=bound2,
                            dtype=jnp.float32)
    out2 = jax.block_until_ready(global_avg_pool(x2, w2, b2, max_ts=16))
    assert out2.shape == (B2, F2o)
    assert jnp.allclose(out2, ref_fn(x2, w2, b2), atol=1e-4, rtol=1e-4), "mismatch (tiled)"

    # --- 3) Ragged shapes: non-divisor B tile + masked final S tile ----------
    B3, S3, F3i, F3o = 10, 50, 64, 96
    x3 = jax.random.normal(keys[6], (B3, S3, F3i), dtype=jnp.float32)
    bound3 = 1.0 / math.sqrt(F3i)
    w3 = jax.random.uniform(keys[7], (F3o, F3i), minval=-bound3, maxval=bound3,
                            dtype=jnp.float32)
    b3 = jax.random.uniform(keys[8], (F3o,), minval=-bound3, maxval=bound3,
                            dtype=jnp.float32)
    out3 = jax.block_until_ready(global_avg_pool(x3, w3, b3, max_ts=16))
    assert out3.shape == (B3, F3o)
    assert jnp.allclose(out3, ref_fn(x3, w3, b3), atol=1e-4, rtol=1e-4), "mismatch (ragged)"

    print("KERNEL_OK")
</pallas_src>

<mosaic_0001>
module attributes {stable_mosaic.version = 11 : i64} {
  func.func @_gap_linear_kernel(%arg0: i32, %arg1: i32, %arg2: memref<2x8x32xf32, #tpu.memory_space<vmem>>, %arg3: memref<32x16xf32, #tpu.memory_space<vmem>>, %arg4: memref<1x16xf32, #tpu.memory_space<vmem>>, %arg5: memref<2x16xf32, #tpu.memory_space<vmem>>, %arg6: memref<2x32xf32, #tpu.memory_space<vmem>>) attributes {dimension_semantics = [#tpu.dimension_semantics<parallel>, #tpu.dimension_semantics<arbitrary>], iteration_bounds = array<i64: 1, 1>, scalar_prefetch = 0 : i64, scratch_operands = 1 : i64, tpu.core_type = #tpu.core_type<tc>, window_params = [{transform_indices = @transform_0, window_bounds = array<i64: 2, 8, 32>}, {pipeline_mode = #tpu.pipeline_mode<synchronous>, transform_indices = @transform_1, window_bounds = array<i64: 32, 16>}, {pipeline_mode = #tpu.pipeline_mode<synchronous>, transform_indices = @transform_2, window_bounds = array<i64: 1, 16>}, {transform_indices = @transform_3, window_bounds = array<i64: 2, 16>}]} {
    %c0_i32 = arith.constant 0 : i32
    %0 = arith.cmpi eq, %arg1, %c0_i32 : i32
    %1 = arith.extui %0 : i1 to i32
    %c0_i32_0 = arith.constant 0 : i32
    %2 = arith.cmpi ne, %1, %c0_i32_0 : i32
    scf.if %2 {
      %cst_9 = arith.constant 0.000000e+00 : f32
      %11 = vector.broadcast %cst_9 : f32 to vector<2x32xf32>
      %c0_10 = arith.constant 0 : index
      %c0_11 = arith.constant 0 : index
      %12 = vector.load %arg6[%c0_10, %c0_11] : memref<2x32xf32, #tpu.memory_space<vmem>>, vector<2x32xf32>
      tpu.vector_store %arg6[%c0_10, %c0_11], %11 {strides = array<i32>} : memref<2x32xf32, #tpu.memory_space<vmem>>, vector<2x32xf32>,
    } else {
    }
    %c0 = arith.constant 0 : index
    %c0_1 = arith.constant 0 : index
    %3 = vector.load %arg6[%c0, %c0_1] : memref<2x32xf32, #tpu.memory_space<vmem>>, vector<2x32xf32>
    %c0_2 = arith.constant 0 : index
    %c0_3 = arith.constant 0 : index
    %c0_4 = arith.constant 0 : index
    %4 = vector.load %arg2[%c0_2, %c0_3, %c0_4] : memref<2x8x32xf32, #tpu.memory_space<vmem>>, vector<2x8x32xf32>
    %cst = arith.constant dense<0.000000e+00> : vector<2x32xf32>
    %5 = vector.multi_reduction <add>, %4, %cst [1] : vector<2x8x32xf32> to vector<2x32xf32>
    %6 = arith.addf %3, %5 : vector<2x32xf32>
    %c0_5 = arith.constant 0 : index
    %c0_6 = arith.constant 0 : index
    %7 = vector.load %arg6[%c0_5, %c0_6] : memref<2x32xf32, #tpu.memory_space<vmem>>, vector<2x32xf32>
    tpu.vector_store %arg6[%c0_5, %c0_6], %6 {strides = array<i32>} : memref<2x32xf32, #tpu.memory_space<vmem>>, vector<2x32xf32>,
    %c0_i32_7 = arith.constant 0 : i32
    %8 = arith.cmpi eq, %arg1, %c0_i32_7 : i32
    %9 = arith.extui %8 : i1 to i32
    %c0_i32_8 = arith.constant 0 : i32
    %10 = arith.cmpi ne, %9, %c0_i32_8 : i32
    scf.if %10 {
      %c0_9 = arith.constant 0 : index
      %c0_10 = arith.constant 0 : index
      %11 = vector.load %arg3[%c0_9, %c0_10] : memref<32x16xf32, #tpu.memory_space<vmem>>, vector<32x16xf32>
      %c0_11 = arith.constant 0 : index
      %c0_12 = arith.constant 0 : index
      %12 = vector.load %arg6[%c0_11, %c0_12] : memref<2x32xf32, #tpu.memory_space<vmem>>, vector<2x32xf32>
      %cst_13 = arith.constant dense<0.000000e+00> : vector<2x16xf32>
      %13 = tpu.matmul %12, %11, %cst_13 {dimension_numbers = #tpu.dot_dimension_numbers<[1], [0], [0], [1], [0, 0, 1, 1], [], []>} : vector<2x32xf32>, vector<32x16xf32>, vector<2x16xf32> -> vector<2x16xf32>
      %cst_14 = arith.constant 1.250000e-01 : f32
      %14 = vector.broadcast %cst_14 : f32 to vector<2x16xf32>
      %15 = arith.mulf %13, %14 : vector<2x16xf32>
      %c0_15 = arith.constant 0 : index
      %c0_16 = arith.constant 0 : index
      %16 = vector.load %arg4[%c0_15, %c0_16] : memref<1x16xf32, #tpu.memory_space<vmem>>, vector<1x16xf32>
      %17 = vector.broadcast %16 : vector<1x16xf32> to vector<2x16xf32>
      %18 = arith.addf %15, %17 : vector<2x16xf32>
      %c0_17 = arith.constant 0 : index
      %c0_18 = arith.constant 0 : index
      %19 = vector.load %arg5[%c0_17, %c0_18] : memref<2x16xf32, #tpu.memory_space<vmem>>, vector<2x16xf32>
      tpu.vector_store %arg5[%c0_17, %c0_18], %18 {strides = array<i32>} : memref<2x16xf32, #tpu.memory_space<vmem>>, vector<2x16xf32>,
    } else {
    }
    return
  }
  func.func @transform_0(%arg0: i32, %arg1: i32) -> (i32, i32, i32) {
    %c0_i32 = arith.constant 0 : i32
    %c0_i32_0 = arith.constant 0 : i32
    return %arg0, %arg1, %c0_i32 : i32, i32, i32
  }
  func.func @transform_1(%arg0: i32, %arg1: i32) -> (i32, i32) {
    %c0_i32 = arith.constant 0 : i32
    %c0_i32_0 = arith.constant 0 : i32
    %c0_i32_1 = arith.constant 0 : i32
    return %c0_i32, %c0_i32_0 : i32, i32
  }
  func.func @transform_2(%arg0: i32, %arg1: i32) -> (i32, i32) {
    %c0_i32 = arith.constant 0 : i32
    %c0_i32_0 = arith.constant 0 : i32
    %c0_i32_1 = arith.constant 0 : i32
    return %c0_i32, %c0_i32_0 : i32, i32
  }
  func.func @transform_3(%arg0: i32, %arg1: i32) -> (i32, i32) {
    %c0_i32 = arith.constant 0 : i32
    %c0_i32_0 = arith.constant 0 : i32
    return %arg0, %c0_i32 : i32, i32
  }
}

</mosaic_0001>

<bundles_post_ra>
// kernel: tpu_custom_call.1
= control target key start
LH: loop header
LB: loop body
LE: loop exit
PB: predicated region body
PF: predicated region fallthrough
CT: control target
= control target key end

     0   :  { %vm19_vm0 = vcmask 254976   ;;  %v196_v1 = vmov 0.0   ;;  %vm197_vm1 = vmmov 0   ;;  %vm24_vm2 = vcmask 261120   ;;  %s248_s0 = inlined_call_operand.vmem [shape: f32[2,8,32], index: 0, kind: input, shape index: {}]   ;;  %s249_s1 = inlined_call_operand.vmem [shape: f32[32,16], index: 1, kind: input, shape index: {}]   ;;  %s250_s2 = inlined_call_operand.vmem [shape: f32[1,16], index: 2, kind: input, shape index: {}]   ;;  %s251_s3 = inlined_call_operand.hbm [shape: f32[2,16], index: 3, kind: output, shape index: {}]  }
   0x1   :  { %v53_v0 = vld [vmem:[%s249_s1 + $0x18] sm:$0xff]  ;;  %20 = vst.msk [vmem:[#allocation2] sm:$0x3] %vm19_vm0, %v196_v1  ;;  %160 = vmatprep.subr.mxu0 %v196_v1  ;;  %v52_v2 = vld [vmem:[%s249_s1 + $0x10] sm:$0xff]  ;;  %168 = vmatprep.mubr.msk.f32.mxu0 %vm197_vm1, %v196_v1  ;;  %v22_v3 = vld [vmem:[%s248_s0] sm:$0xff] }
   0x2   :  { %v23_v4 = vld [vmem:[%s248_s0 + $0x8] sm:$0xff]  ;;  %161 = vmatpush3.msra.mxu0 %v53_v0  ;;  %v25_v5 = vsel %vm24_vm2, %v22_v3, 0.0 }
   0x3   :  { %v32_v6 = vsel %vm24_vm2, %v23_v4, 0.0 }
   0x4   :  { %8 = vsyncpa [#allocation4], 0  ;;  %162 = vmatprep.subr.mxu0 %v196_v1  ;;  %v51_v7 = vld [vmem:[%s249_s1 + $0x8] sm:$0xff]  ;;  %v26_v8 = vrot.slane %v25_v5, 4  ;;  %v33_v9 = vrot.slane %v32_v6, 4  ;;  %v50_v10 = vld [vmem:[%s249_s1] sm:$0xff] }
   0x5   :  { %163 = vmatpush3.msra.mxu0 %v52_v2  ;;  %vm41_vm3 = vcmask 1041409   ;;  %v154_v26 = vld [vmem:[%s250_s2] ss:$0 sm:$0xff]  ;;  %s198_s24 = smov [#allocation3]   ;;  %vm137_vm4 = vcmask 123904  }
   0x6   :  { %164 = vmatprep.subr.mxu0 %v196_v1  ;;  %v27_v11 = vadd.f32 %v26_v8, %v25_v5  ;;  %v34_v12 = vadd.f32 %v33_v9, %v32_v6  ;;  %s145_s25 = sshll.u32 %s198_s24, 4  ;;  %s146_s25 = int_to_ptr.vmem [resolvable:$true] %s145_s25 }
   0x7   :  { %165 = vmatpush3.msra.mxu0 %v51_v7  ;;  %s174_s26 = scalar_lea.vmem %s146_s25, 32  ;;  %p179_p1 = scmp.lt.s32.totalorder %s146_s25, %s146_s25 }
   0x8   :  { %166 = vmatprep.subr.mxu0 %v196_v1  ;;  %v28_v13 = vrot.slane %v27_v11, 2  ;;  %v35_v14 = vrot.slane %v34_v12, 2  ;;  %v21_v19 = vld [vmem:[#allocation2] sm:$0x3]  ;;  %p175_p0 = scmp.ne.s32.totalorder %s146_s25, %s174_s26  ;;  %p180_p2 = scmp.lt.s32.totalorder %s174_s26, %s174_s26 }
   0x9   :  { %167 = vmatpush3.msra.mxu0 %v50_v10 }
   0xa   :  { %v29_v15 = vadd.f32 %v28_v13, %v27_v11  ;;  %v36_v16 = vadd.f32 %v35_v14, %v34_v12  ;;  %p181_p3 = por %p180_p2, %p179_p1 }
   0xc   :  { %v30_v17 = vrot.slane %v29_v15, 1  ;;  %v37_v18 = vrot.slane %v36_v16, 1  ;;  %p182_p4 = pnand %p181_p3, %p175_p0 }
   0xe   :  { %v31_v20 = vadd.f32 %v30_v17, %v29_v15  ;;  %v38_v21 = vadd.f32 %v37_v18, %v36_v16 }
  0x10   :  { %v42_v22 = vsel %vm41_vm3, %v38_v21, %v31_v20 }
  0x11   :  { %v44_v23 = vadd.f32 %v42_v22, %v21_v19 }
  0x13   :  { %46 = vst.msk [vmem:[#allocation2] sm:$0x3] %vm19_vm0, %v44_v23 }
  0x1a   :  { %v54_v24 = vld [vmem:[#allocation2] sm:$0x3] }
  0x1b   :  { %169 = vmatmul.mubr.msk.f32.vlgmr.msra.gmra.mxu0 %vm24_vm2, %v54_v24 }
  0xdb   :  { %v124_v25 = vpop.f32.mrf.mxu0 }
  0xdc   :  { %v128_v27 = vmul.f32 0.125, %v124_v25 }
  0xdd   :  { %v170_v28 = vpop.f32.mrf.mxu0 }
  0xde   :  { %v136_v29 = vadd.f32 %v154_v26, %v128_v27 }
  0xe0   :  { %138 = vst.msk [vmem:[#allocation3] sm:$0x3] %vm137_vm4, %v136_v29 }
  0xe1   :  { %185 = shalt.err (!%p182_p4)
}
  0xe2   :  { %148 = dma.vmem_to_hbm [thread:$0]  %s146_s25, 32, %s251_s3, [#allocation4]  }
  0xe3   :  { %194 = dma.done.wait [#allocation4], 32  }
  0xe4   :  { %195 = vsyncadd [#allocation4], 4294967264 }
  0xe5   :  { %152 = vsyncpa [#allocation4], 1 }

</bundles_post_ra>
